<compile_context>
chip_gen: v7x
topology: tpu7x:2x2x1
jax: 0.10.0
libtpu: 0.0.40
codegen_flags: <defaults>
</compile_context>

<pallas_src>
import functools

import jax
import jax.numpy as jnp
from jax import lax
from jax.experimental import pallas as pl
from jax.experimental.pallas import tpu as pltpu


def _round_up(x, m):
    return ((x + m - 1) // m) * m


def _vmem_capacity_bytes():
    """Per-generation VMEM capacity (v5e/v6e: 128 MiB, v7x: 64 MiB)."""
    try:
        return int(pltpu.get_tpu_info().vmem_capacity_bytes)
    except Exception:
        return 64 << 20                      # conservative default (v7x)


def _vmem_need_bytes(bb, np_, dp, in_bytes):
    """Rough VMEM model for one grid step with bb batch elements packed."""
    bn = bb * np_
    return (2 * bn * dp * in_bytes           # double-buffered input slab
            + 2 * bn * dp * 4                # double-buffered f32 output slab
            + 3 * dp * dp * in_bytes         # fused q|k weights + graph weights
            + bn * bn * 4                    # additive mask
            + 3 * bn * bn * 4                # scores / exp / edge temporaries
            + 4 * bn * dp * 4)               # q, k, qk, sgr f32 temporaries


def _pick_block_batch(B, np_, dp, in_bytes, vmem_budget):
    """Batch elements per grid step: BN <= 128, >= 2 grid steps, fits VMEM."""
    bb = max(1, min(B, 128 // max(np_, 1)))  # softmax/score work scales as BN^2
    if B >= 2:
        bb = max(1, min(bb, B // 2))         # keep both v7x TensorCores busy
    while B % bb:
        bb -= 1
    while bb > 1 and _vmem_need_bytes(bb, np_, dp, in_bytes) > vmem_budget:
        bb -= 1
        while B % bb:
            bb -= 1
    return bb


def _const_spec(shape, nbytes):
    """BlockSpec for a grid-invariant operand (constant index_map).

    Large operands are single-buffered (Pallas otherwise allocates two
    buffers even though the block is DMA'd only once) -- this matters for
    big weights against v7x's 64 MiB VMEM.  Small operands keep the default.
    """
    index_map = lambda i: (0,) * len(shape)
    if nbytes > (2 << 20) and hasattr(pl, "Buffered"):
        try:
            return pl.BlockSpec(shape, index_map, pipeline_mode=pl.Buffered(1))
        except TypeError:                    # older jax without pipeline_mode
            pass
    return pl.BlockSpec(shape, index_map)


def _graph_reasoning_kernel(*refs, dp, use_mask):
    if use_mask:
        x_ref, wqk_ref, bqk_ref, wg_ref, bg_ref, mask_ref, o_ref = refs
    else:
        x_ref, wqk_ref, bqk_ref, wg_ref, bg_ref, o_ref = refs

    x = x_ref[...]                           # (BN, Dp), bf16 (or f32)
    cdt = x.dtype

    # Fused query/key projection: one MXU pass, f32 accumulation, f32 bias.
    qk = jnp.dot(x, wqk_ref[...], preferred_element_type=jnp.float32)
    qk = qk + bqk_ref[...]                   # (BN, 2*Dp) f32
    q = qk[:, :dp].astype(cdt)               # lane-aligned slices (dp % 128 == 0)
    k = qk[:, dp:].astype(cdt)

    # Scores q @ k^T, contracting the last dims of both operands.  With the
    # slab capped at BN <= 128 any RHS relayout stays cheap on the XLU next
    # to the softmax row reductions.
    s = lax.dot_general(q, k, (((1,), (1,)), ((), ())),
                        preferred_element_type=jnp.float32)   # (BN, BN) f32

    if use_mask:
        # Additive block-diagonal / pad-node mask (0 or -1e30) precomputed in
        # the wrapper: a single VPU add on the BN^2 hot path (no cmp+select).
        s = s + mask_ref[...]

    # Numerically stable softmax, all in f32.  Exact reciprocal: the approx
    # EUP reciprocal's ~1e-3 error broke the reference check and only saves
    # BN divides here.
    s = s - jnp.max(s, axis=-1, keepdims=True)
    e = jnp.exp(s)
    edge = e * (1.0 / jnp.sum(e, axis=-1, keepdims=True))

    # Graph aggregation + output projection + relu (bf16 operands, f32 accum).
    sgr = jnp.dot(edge.astype(cdt), x, preferred_element_type=jnp.float32)
    out = jnp.dot(sgr.astype(cdt), wg_ref[...],
                  preferred_element_type=jnp.float32) + bg_ref[...]
    o_ref[...] = jnp.maximum(out, 0.0).astype(o_ref.dtype)


def graph_reasoning(sim_emb, wq, bq, wk, bk, wg, bg, *,
                    block_batch=None, use_bf16=True):
    """Pallas GraphReasoning forward.

    sim_emb: (B, N, D) float32, N = L+1, D = sim_dim.
    Weights are PyTorch nn.Linear style (out, in) = (D, D); biases (D,).
    """
    B, N, D = sim_emb.shape
    out_dtype = sim_emb.dtype
    cdt = jnp.bfloat16 if use_bf16 else jnp.float32
    in_bytes = 2 if use_bf16 else 4

    # ---- wrapper-side layout plumbing (free) -------------------------------
    # Pad D to a lane-dense multiple of 128 (unmasked vld/vst; a no-op for the
    # canonical sim_dim=256) and N to a multiple of 8 (sublane rule) so any
    # batch packing works and the grid never collapses to a single step.
    Dp = _round_up(D, 128)
    Np = _round_up(N, 8)

    x_pad = sim_emb
    if (Np, Dp) != (N, D):
        x_pad = jnp.pad(sim_emb, ((0, 0), (0, Np - N), (0, Dp - D)))
    x2 = x_pad.reshape(B * Np, Dp).astype(cdt)

    def pad_w(w):
        return jnp.pad(w, ((0, Dp - D), (0, Dp - D))) if Dp != D else w

    def pad_b(b):
        return jnp.pad(b, (0, Dp - D)) if Dp != D else b

    # Pre-transpose to (in, out); fuse Q and K projections into one matmul.
    wqk = jnp.concatenate([pad_w(wq).T, pad_w(wk).T], axis=1).astype(cdt)
    bqk = jnp.concatenate([pad_b(bq), pad_b(bk)]).reshape(1, 2 * Dp)
    bqk = bqk.astype(jnp.float32)
    wg_t = pad_w(wg).T.astype(cdt)
    bg2 = pad_b(bg).reshape(1, Dp).astype(jnp.float32)

    # ---- VMEM-aware batch packing ------------------------------------------
    vmem_cap = _vmem_capacity_bytes()
    if block_batch is None:
        BB = _pick_block_batch(B, Np, Dp, in_bytes, vmem_cap * 3 // 4)
    else:
        if B % block_batch != 0:
            raise ValueError(
                f"block_batch={block_batch} must divide batch size {B}")
        BB = int(block_batch)
    BN = BB * Np
    grid = (B // BB,)
    need = _vmem_need_bytes(BB, Np, Dp, in_bytes)

    # Mask only needed when batch elements share a slab or N was padded;
    # when one (unpadded) batch element fills the slab the mask is deleted.
    use_mask = (BB > 1) or (Np != N)

    args = [x2, wqk, bqk, wg_t, bg2]
    in_specs = [
        pl.BlockSpec((BN, Dp), lambda i: (i, 0)),
        _const_spec((Dp, 2 * Dp), Dp * 2 * Dp * in_bytes),
        _const_spec((1, 2 * Dp), 2 * Dp * 4),
        _const_spec((Dp, Dp), Dp * Dp * in_bytes),
        _const_spec((1, Dp), Dp * 4),
    ]
    if use_mask:
        node = jnp.arange(BN, dtype=jnp.int32)
        same_batch = (node[:, None] // Np) == (node[None, :] // Np)
        valid_col = (node[None, :] % Np) < N
        mask = jnp.where(same_batch & valid_col, 0.0, -1e30).astype(jnp.float32)
        args.append(mask)
        in_specs.append(_const_spec((BN, BN), BN * BN * 4))

    cp_kwargs = dict(dimension_semantics=("parallel",))
    if 2 * need > (16 << 20):    # above the smallest (v5e) default scoped limit
        cp_kwargs["vmem_limit_bytes"] = int(min(2 * need, vmem_cap * 9 // 10))

    kernel = functools.partial(_graph_reasoning_kernel, dp=Dp, use_mask=use_mask)

    out = pl.pallas_call(
        kernel,
        out_shape=jax.ShapeDtypeStruct((B * Np, Dp), out_dtype),
        grid_spec=pltpu.PrefetchScalarGridSpec(
            num_scalar_prefetch=0,
            grid=grid,
            in_specs=in_specs,
            out_specs=pl.BlockSpec((BN, Dp), lambda i: (i, 0)),
        ),
        compiler_params=pltpu.CompilerParams(**cp_kwargs),
    )(*args)

    out = out.reshape(B, Np, Dp)
    if (Np, Dp) != (N, D):
        out = out[:, :N, :D]
    return out


def init_params(key, sim_dim):
    """Matches PyTorch init_weights(): W ~ U(-r, r), r = sqrt(6)/sqrt(2*dim),
    b = 0.  Weights stored (out, in) like nn.Linear."""
    r = (6.0 ** 0.5) / ((2 * sim_dim) ** 0.5)
    kq, kk, kg = jax.random.split(key, 3)
    shape = (sim_dim, sim_dim)
    wq = jax.random.uniform(kq, shape, jnp.float32, -r, r)
    wk = jax.random.uniform(kk, shape, jnp.float32, -r, r)
    wg = jax.random.uniform(kg, shape, jnp.float32, -r, r)
    zeros = jnp.zeros((sim_dim,), jnp.float32)
    return wq, zeros, wk, zeros, wg, zeros


def reference(sim_emb, wq, bq, wk, bk, wg, bg):
    """Pure-JAX reference mirroring the PyTorch forward (weights (out, in))."""
    q = jnp.einsum('bnd,ed->bne', sim_emb, wq) + bq
    k = jnp.einsum('bnd,ed->bne', sim_emb, wk) + bk
    edge = jax.nn.softmax(jnp.einsum('bnd,bmd->bnm', q, k), axis=-1)
    sgr = jnp.einsum('bnm,bmd->bnd', edge, sim_emb)
    return jnp.maximum(jnp.einsum('bnd,ed->bne', sgr, wg) + bg, 0.0)


def reference_matched(sim_emb, wq, bq, wk, bk, wg, bg, use_bf16=True):
    """Reference mirroring the kernel's exact cast points (bf16 MXU operands,
    f32 accumulation, f32 softmax) so the correctness check is tight and
    independent of backend matmul-precision conventions."""
    cdt = jnp.bfloat16 if use_bf16 else jnp.float32
    x = sim_emb.astype(cdt)
    wqc, wkc, wgc = (w.astype(cdt) for w in (wq, wk, wg))
    q = jnp.einsum('bnd,ed->bne', x, wqc,
                   preferred_element_type=jnp.float32) + bq
    k = jnp.einsum('bnd,ed->bne', x, wkc,
                   preferred_element_type=jnp.float32) + bk
    s = jnp.einsum('bnd,bmd->bnm', q.astype(cdt), k.astype(cdt),
                   preferred_element_type=jnp.float32)
    s = s - jnp.max(s, axis=-1, keepdims=True)
    e = jnp.exp(s)
    edge = e * (1.0 / jnp.sum(e, axis=-1, keepdims=True))
    sgr = jnp.einsum('bnm,bmd->bnd', edge.astype(cdt), x,
                     preferred_element_type=jnp.float32)
    out = jnp.einsum('bnd,ed->bne', sgr.astype(cdt), wgc,
                     preferred_element_type=jnp.float32) + bg
    return jnp.maximum(out, 0.0)


if __name__ == "__main__":
    root = jax.random.PRNGKey(0)

    def check(case_idx, B, N, D, block_batch=None):
        kx, kp = jax.random.split(jax.random.fold_in(root, case_idx))
        sim_emb = jax.random.normal(kx, (B, N, D), jnp.float32)
        wq, _, wk, _, wg, _ = init_params(kp, D)
        # non-zero biases so the bias path is actually exercised
        kb1, kb2, kb3 = jax.random.split(jax.random.fold_in(kp, 7), 3)
        bq = 0.1 * jax.random.normal(kb1, (D,), jnp.float32)
        bk = 0.1 * jax.random.normal(kb2, (D,), jnp.float32)
        bg = 0.1 * jax.random.normal(kb3, (D,), jnp.float32)
        params = (wq, bq, wk, bk, wg, bg)

        out = jax.block_until_ready(
            graph_reasoning(sim_emb, *params,
                            block_batch=block_batch, use_bf16=True))
        assert out.shape == (B, N, D)
        ref = reference_matched(sim_emb, *params, use_bf16=True)
        assert jnp.allclose(out, ref, atol=5e-3, rtol=5e-3), (
            f"case {case_idx}: max abs err "
            f"{float(jnp.max(jnp.abs(out - ref)))}")
        assert float(jnp.min(out)) >= 0.0   # relu output must be non-negative

    # packed slab (2 batch elems / step) with cross-batch + pad-node mask
    check(0, B=4, N=7, D=32)
    # one batch element per step, pad-node mask only
    check(1, B=4, N=7, D=32, block_batch=1)
    # mask-free fast path: N already a multiple of 8, no padding needed
    check(2, B=2, N=8, D=32)

    print("KERNEL_OK")
</pallas_src>

<mosaic_0001>
module attributes {stable_mosaic.version = 11 : i64} {
  func.func @_graph_reasoning_kernel(%arg0: i32, %arg1: memref<16x128xbf16, #tpu.memory_space<vmem>>, %arg2: memref<128x256xbf16, #tpu.memory_space<vmem>>, %arg3: memref<1x256xf32, #tpu.memory_space<vmem>>, %arg4: memref<128x128xbf16, #tpu.memory_space<vmem>>, %arg5: memref<1x128xf32, #tpu.memory_space<vmem>>, %arg6: memref<16x16xf32, #tpu.memory_space<vmem>>, %arg7: memref<16x128xf32, #tpu.memory_space<vmem>>) attributes {dimension_semantics = [#tpu.dimension_semantics<parallel>], iteration_bounds = array<i64: 2>, scalar_prefetch = 0 : i64, scratch_operands = 0 : i64, tpu.core_type = #tpu.core_type<tc>, window_params = [{transform_indices = @transform_0, window_bounds = array<i64: 16, 128>}, {pipeline_mode = #tpu.pipeline_mode<synchronous>, transform_indices = @transform_1, window_bounds = array<i64: 128, 256>}, {pipeline_mode = #tpu.pipeline_mode<synchronous>, transform_indices = @transform_2, window_bounds = array<i64: 1, 256>}, {pipeline_mode = #tpu.pipeline_mode<synchronous>, transform_indices = @transform_3, window_bounds = array<i64: 128, 128>}, {pipeline_mode = #tpu.pipeline_mode<synchronous>, transform_indices = @transform_4, window_bounds = array<i64: 1, 128>}, {pipeline_mode = #tpu.pipeline_mode<synchronous>, transform_indices = @transform_5, window_bounds = array<i64: 16, 16>}, {transform_indices = @transform_6, window_bounds = array<i64: 16, 128>}]} {
    %c0 = arith.constant 0 : index
    %c0_0 = arith.constant 0 : index
    %0 = vector.load %arg1[%c0, %c0_0] : memref<16x128xbf16, #tpu.memory_space<vmem>>, vector<16x128xbf16>
    %c0_1 = arith.constant 0 : index
    %c0_2 = arith.constant 0 : index
    %1 = vector.load %arg2[%c0_1, %c0_2] : memref<128x256xbf16, #tpu.memory_space<vmem>>, vector<128x256xbf16>
    %cst = arith.constant dense<0.000000e+00> : vector<16x256xf32>
    %2 = tpu.matmul %0, %1, %cst {dimension_numbers = #tpu.dot_dimension_numbers<[1], [0], [0], [1], [0, 0, 1, 1], [], []>} : vector<16x128xbf16>, vector<128x256xbf16>, vector<16x256xf32> -> vector<16x256xf32>
    %c0_3 = arith.constant 0 : index
    %c0_4 = arith.constant 0 : index
    %3 = vector.load %arg3[%c0_3, %c0_4] : memref<1x256xf32, #tpu.memory_space<vmem>>, vector<1x256xf32>
    %4 = vector.broadcast %3 : vector<1x256xf32> to vector<16x256xf32>
    %5 = arith.addf %2, %4 : vector<16x256xf32>
    %6 = vector.extract_strided_slice %5 {offsets = [0, 0], sizes = [16, 128], strides = [1, 1]} : vector<16x256xf32> to vector<16x128xf32>
    %7 = arith.truncf %6 : vector<16x128xf32> to vector<16x128xbf16>
    %8 = vector.extract_strided_slice %5 {offsets = [0, 128], sizes = [16, 128], strides = [1, 1]} : vector<16x256xf32> to vector<16x128xf32>
    %9 = arith.truncf %8 : vector<16x128xf32> to vector<16x128xbf16>
    %cst_5 = arith.constant dense<0.000000e+00> : vector<16x16xf32>
    %10 = tpu.matmul %7, %9, %cst_5 {dimension_numbers = #tpu.dot_dimension_numbers<[1], [1], [0], [0], [0, 0, 1, 0], [], []>} : vector<16x128xbf16>, vector<16x128xbf16>, vector<16x16xf32> -> vector<16x16xf32>
    %c0_6 = arith.constant 0 : index
    %c0_7 = arith.constant 0 : index
    %11 = vector.load %arg6[%c0_6, %c0_7] : memref<16x16xf32, #tpu.memory_space<vmem>>, vector<16x16xf32>
    %12 = arith.addf %10, %11 : vector<16x16xf32>
    %cst_8 = arith.constant dense<0xFF800000> : vector<16xf32>
    %13 = vector.multi_reduction <maximumf>, %12, %cst_8 [1] : vector<16x16xf32> to vector<16xf32>
    %14 = vector.shape_cast %13 : vector<16xf32> to vector<16x1xf32>
    %15 = vector.broadcast %14 : vector<16x1xf32> to vector<16x16xf32>
    %16 = arith.subf %12, %15 : vector<16x16xf32>
    %17 = math.exp %16 : vector<16x16xf32>
    %cst_9 = arith.constant dense<0.000000e+00> : vector<16xf32>
    %18 = vector.multi_reduction <add>, %17, %cst_9 [1] : vector<16x16xf32> to vector<16xf32>
    %19 = vector.shape_cast %18 : vector<16xf32> to vector<16x1xf32>
    %cst_10 = arith.constant 1.000000e+00 : f32
    %20 = vector.broadcast %cst_10 : f32 to vector<16x1xf32>
    %21 = arith.divf %20, %19 : vector<16x1xf32>
    %22 = vector.broadcast %21 : vector<16x1xf32> to vector<16x16xf32>
    %23 = arith.mulf %17, %22 : vector<16x16xf32>
    %24 = arith.truncf %23 : vector<16x16xf32> to vector<16x16xbf16>
    %cst_11 = arith.constant dense<0.000000e+00> : vector<16x128xf32>
    %25 = tpu.matmul %24, %0, %cst_11 {dimension_numbers = #tpu.dot_dimension_numbers<[1], [0], [0], [1], [0, 0, 1, 1], [], []>} : vector<16x16xbf16>, vector<16x128xbf16>, vector<16x128xf32> -> vector<16x128xf32>
    %26 = arith.truncf %25 : vector<16x128xf32> to vector<16x128xbf16>
    %c0_12 = arith.constant 0 : index
    %c0_13 = arith.constant 0 : index
    %27 = vector.load %arg4[%c0_12, %c0_13] : memref<128x128xbf16, #tpu.memory_space<vmem>>, vector<128x128xbf16>
    %cst_14 = arith.constant dense<0.000000e+00> : vector<16x128xf32>
    %28 = tpu.matmul %26, %27, %cst_14 {dimension_numbers = #tpu.dot_dimension_numbers<[1], [0], [0], [1], [0, 0, 1, 1], [], []>} : vector<16x128xbf16>, vector<128x128xbf16>, vector<16x128xf32> -> vector<16x128xf32>
    %c0_15 = arith.constant 0 : index
    %c0_16 = arith.constant 0 : index
    %29 = vector.load %arg5[%c0_15, %c0_16] : memref<1x128xf32, #tpu.memory_space<vmem>>, vector<1x128xf32>
    %30 = vector.broadcast %29 : vector<1x128xf32> to vector<16x128xf32>
    %31 = arith.addf %28, %30 : vector<16x128xf32>
    %cst_17 = arith.constant 0.000000e+00 : f32
    %32 = vector.broadcast %cst_17 : f32 to vector<16x128xf32>
    %33 = arith.maximumf %31, %32 : vector<16x128xf32>
    %c0_18 = arith.constant 0 : index
    %c0_19 = arith.constant 0 : index
    %34 = vector.load %arg7[%c0_18, %c0_19] : memref<16x128xf32, #tpu.memory_space<vmem>>, vector<16x128xf32>
    tpu.vector_store %arg7[%c0_18, %c0_19], %33 {strides = array<i32>} : memref<16x128xf32, #tpu.memory_space<vmem>>, vector<16x128xf32>,
    return
  }
  func.func @transform_0(%arg0: i32) -> (i32, i32) {
    %c0_i32 = arith.constant 0 : i32
    %c0_i32_0 = arith.constant 0 : i32
    return %arg0, %c0_i32 : i32, i32
  }
  func.func @transform_1(%arg0: i32) -> (i32, i32) {
    %c0_i32 = arith.constant 0 : i32
    %c0_i32_0 = arith.constant 0 : i32
    %c0_i32_1 = arith.constant 0 : i32
    return %c0_i32, %c0_i32_0 : i32, i32
  }
  func.func @transform_2(%arg0: i32) -> (i32, i32) {
    %c0_i32 = arith.constant 0 : i32
    %c0_i32_0 = arith.constant 0 : i32
    %c0_i32_1 = arith.constant 0 : i32
    return %c0_i32, %c0_i32_0 : i32, i32
  }
  func.func @transform_3(%arg0: i32) -> (i32, i32) {
    %c0_i32 = arith.constant 0 : i32
    %c0_i32_0 = arith.constant 0 : i32
    %c0_i32_1 = arith.constant 0 : i32
    return %c0_i32, %c0_i32_0 : i32, i32
  }
  func.func @transform_4(%arg0: i32) -> (i32, i32) {
    %c0_i32 = arith.constant 0 : i32
    %c0_i32_0 = arith.constant 0 : i32
    %c0_i32_1 = arith.constant 0 : i32
    return %c0_i32, %c0_i32_0 : i32, i32
  }
  func.func @transform_5(%arg0: i32) -> (i32, i32) {
    %c0_i32 = arith.constant 0 : i32
    %c0_i32_0 = arith.constant 0 : i32
    %c0_i32_1 = arith.constant 0 : i32
    return %c0_i32, %c0_i32_0 : i32, i32
  }
  func.func @transform_6(%arg0: i32) -> (i32, i32) {
    %c0_i32 = arith.constant 0 : i32
    %c0_i32_0 = arith.constant 0 : i32
    return %arg0, %c0_i32 : i32, i32
  }
}

</mosaic_0001>

<bundles_post_ra>
// kernel: tpu_custom_call.1
= control target key start
LH: loop header
LB: loop body
LE: loop exit
PB: predicated region body
PF: predicated region fallthrough
CT: control target
= control target key end

     0   :  { %s1578_s0 = inlined_call_operand.hbm [shape: bf16[32,128], index: 0, kind: input, shape index: {}]   ;;  %s1579_s1 = inlined_call_operand.hbm [shape: bf16[128,256], index: 1, kind: input, shape index: {}]   ;;  %s1580_s2 = inlined_call_operand.vmem [shape: f32[1,256], index: 2, kind: input, shape index: {}]   ;;  %s1581_s3 = inlined_call_operand.hbm [shape: bf16[128,128], index: 3, kind: input, shape index: {}]   ;;  %s1582_s4 = inlined_call_operand.hbm [shape: f32[1,128], index: 4, kind: input, shape index: {}]   ;;  %s1583_s5 = inlined_call_operand.vmem [shape: f32[16,16], index: 5, kind: input, shape index: {}]   ;;  %s1584_s6 = inlined_call_operand.hbm [shape: f32[32,128], index: 6, kind: output, shape index: {}]  }
   0x1   :  { %1588 = sst [smem:[#allocation15_spill]] %s1579_s1 }
   0x2   :  { %11 = vsyncpa [#allocation3], 0 }
   0x3   :  { %13 = vsyncpa [#allocation3 + $0x1], 0 }
   0x4   :  { %14 = vsyncpa [#allocation6], 0 }
   0x5   :  { %15 = vsyncpa [#allocation9], 0 }
   0x6   :  { %16 = vsyncpa [#allocation4], 0 }
   0x7   :  { %18 = vsyncpa [#allocation4 + $0x1], 0  ;;  %s1282_s21 = smov 0   ;;  %s1284_s22 = smov 0  }
   0x8   :  { %s1286_s23 = smov 0   ;;  %s1288_s24 = smov 0  }
   0x9 LB: > { %s1303_s25 = sadd.s32 4294967295, %s1231_s24   ;;  %s822_s26 = sadd.s32 4294967294, %s1231_s24   ;;  %s1231_s24 = sphi %s1288_s24, %s1609_s24   ;;  %s1227_s23 = sphi %s1286_s23, %s1608_s23   ;;  %s1223_s22 = sphi %s1284_s22, %s1607_s22   ;;  %s1219_s21 = sphi %s1282_s21, %s1606_s21  }
   0xa   : > { %p44_p0 = scmp.ne.s32.totalorder %s1223_s22, %s1219_s21  ;;  %p1585_p1 = scmp.eq.s32.totalorder %s1303_s25, 0 }
   0xb   : > { %p179_p3 = scmp.eq.s32.totalorder %s822_s26, 1  ;;  %p823_p5 = scmp.ge.s32.totalorder %s1231_s24, 1 }
   0xc   : > { %p1312_p4 = por %p1585_p1, %p44_p0  ;;  %p186_p7 = scmp.lt.s32.totalorder %s1231_s24, 3 }
   0xd   : > { %p1317_p6 = por %p179_p3, %p44_p0  ;;  %s1233_s30 = smov [#allocation5]  }
   0xe   : > { %s1589_s27 = scalar_select %p1312_p4, 1, 0 }
   0xf   : > { %s1590_s28 = scalar_select %p1317_p6, 1, 0 }
  0x10   : > { %p1322_p8 = pnand %p823_p5, %p186_p7  ;;  %s198_s7 = sshll.u32 %s1233_s30, 4  ;;  %s1326_s7 = int_to_ptr.vmem [resolvable:$true] %s198_s7 }
  0x11   : > { %s1234_s9 = smov [#allocation7]   ;;  %s1593_s1 = sld [smem:[#allocation15_spill]] }
  0x12   : > { %s1591_s29 = scalar_select %p1322_p8, 1, 0 }
  0x13   : > { %p932_p9 = pneg %p1322_p8  ;;  %s214_s10 = sshll.u32 %s1234_s9, 4  ;;  %s1337_s10 = int_to_ptr.vmem [resolvable:$true] %s214_s10 }
  0x15   : > { %p1333_p11 = pnand %p932_p9, %p1585_p1 }
  0x17   : > { %s1043_s13 = scalar_lea.hbm %s1593_s1, 2048  ;;  %p1347_p13 = pneg %p1333_p11 }
  0x18   : > { %p1044_p12 = scmp.ne.s32.totalorder %s1593_s1, %s1043_s13  ;;  %p1050_p5 = scmp.lt.u32.totalorder %s1043_s13, %s1593_s1 }
  0x1a   : > { %p1046_p0 = pnand %p1347_p13, %p1044_p12 }
  0x1c   : > { %p1047_p3 = pneg %p1046_p0 }
  0x1e   : > { %p1052_p7 = pnand %p1050_p5, %p1047_p3 }
  0x20   : > { %1055 = shalt.err (!%p1052_p7)
}
  0x21   : > { %s1056_s19 = scalar_lea.vmem %s1326_s7, 2048  ;;  %p1064_p2 = scmp.lt.s32.totalorder %s1326_s7, %s1326_s7 }
  0x22   : > { %p1057_p9 = scmp.ne.s32.totalorder %s1326_s7, %s1056_s19  ;;  %p1065_p6 = scmp.lt.s32.totalorder %s1056_s19, %s1056_s19 }
  0x24   : > { %p1059_p10 = pnand %p1057_p9, %p1347_p13  ;;  %p1066_p12 = por %p1065_p6, %p1064_p2 }
  0x26   : > { %p1060_p1 = pneg %p1059_p10 }
  0x28   : > { %p1067_p0 = pnand %p1066_p12, %p1060_p1 }
  0x2a   : > { %1070 = shalt.err (!%p1067_p0)
}
  0x2b   : > { %s1235_s20 = smov 128   ;;  %s1236_s26 = smov 8  }
  0x2c   : > { %935 = dma.hbm_to_vmem [thread:$0]  (!%p1333_p11), %s1593_s1, 2048, %s1326_s7, [#allocation6], %s1235_s20, %s1235_s20, %s1236_s26  }
  0x2d   : > { %s1071_s13 = scalar_lea.hbm %s1581_s3, 1024 }
  0x2e   : > { %p1072_p2 = scmp.ne.s32.totalorder %s1581_s3, %s1071_s13  ;;  %p1078_p10 = scmp.lt.u32.totalorder %s1071_s13, %s1581_s3 }
  0x30   : > { %p1074_p1 = pnand %p1072_p2, %p1347_p13 }
  0x32   : > { %p1075_p6 = pneg %p1074_p1 }
  0x34   : > { %p1080_p3 = pnand %p1078_p10, %p1075_p6 }
  0x36   : > { %1083 = shalt.err (!%p1080_p3)
}
  0x37   : > { %s1084_s7 = scalar_lea.vmem %s1337_s10, 1024  ;;  %p1092_p12 = scmp.lt.s32.totalorder %s1337_s10, %s1337_s10 }
  0x38   : > { %p1085_p5 = scmp.ne.s32.totalorder %s1337_s10, %s1084_s7  ;;  %p1093_p0 = scmp.lt.s32.totalorder %s1084_s7, %s1084_s7 }
  0x3a   : > { %p1087_p7 = pnand %p1085_p5, %p1347_p13  ;;  %p1094_p2 = por %p1093_p0, %p1092_p12 }
  0x3c   : > { %p1088_p9 = pneg %p1087_p7 }
  0x3e   : > { %p1095_p1 = pnand %p1094_p2, %p1088_p9 }
  0x40   : > { %1098 = shalt.err (!%p1095_p1)
}
  0x41   : > { %s1237_s19 = smov 64   ;;  %s1238_s20 = smov 4  }
  0x42   : > { %938 = dma.hbm_to_vmem [thread:$0]  (!%p1333_p11), %s1581_s3, 1024, %s1337_s10, [#allocation6], %s1237_s19, %s1237_s19, %s1238_s20  }
  0x43   : > { %s1239_s9 = smov [#allocation8]   ;;  %s1395_s12 = sadd.s32 1, %s1231_s24  }
  0x44   : > { %s228_s11 = sshll.u32 %s1239_s9, 4  ;;  %s1099_s15 = scalar_lea.hbm %s1582_s4, 16  ;;  %s229_s11 = int_to_ptr.vmem [resolvable:$true] %s228_s11 }
  0x45   : > { %p1100_p6 = scmp.ne.s32.totalorder %s1582_s4, %s1099_s15  ;;  %p1106_p5 = scmp.lt.u32.totalorder %s1099_s15, %s1582_s4 }
  0x47   : > { %p1102_p10 = pnand %p1100_p6, %p1347_p13 }
  0x49   : > { %p1103_p3 = pneg %p1102_p10 }
  0x4b   : > { %p1108_p7 = pnand %p1106_p5, %p1103_p3 }
  0x4d   : > { %1111 = shalt.err (!%p1108_p7)
}
  0x4e   : > { %s1112_s10 = scalar_lea.vmem %s229_s11, 16  ;;  %s1119_s26 = scalar_lea.vmem %s229_s11, 32 }
  0x4f   : > { %p1113_p9 = scmp.ne.s32.totalorder %s229_s11, %s1112_s10  ;;  %p1120_p2 = scmp.lt.s32.totalorder %s229_s11, %s229_s11 }
  0x50   : > { %p1121_p1 = scmp.lt.s32.totalorder %s1119_s26, %s1112_s10 }
  0x51   : > { %p1115_p12 = pnand %p1113_p9, %p1347_p13 }
  0x52   : > { %p1122_p4 = por %p1121_p1, %p1120_p2 }
  0x53   : > { %p1116_p0 = pneg %p1115_p12 }
  0x55   : > { %p1123_p8 = pnand %p1122_p4, %p1116_p0 }
  0x57   : > { %1126 = shalt.err (!%p1123_p8)
}
  0x58   : > { %941 = dma.hbm_to_vmem [thread:$0]  (!%p1333_p11), %s1582_s4, 16, %s229_s11, [#allocation9]  }
  0x59   : > { %s28_s1 = ssub.s32 %s1231_s24, %s1395_s12  ;;  %s31_s16 = sadd.s32 1, %s1227_s23 }
  0x5a   : > { %p29_p4 = scmp.eq.s32.totalorder %s28_s1, 0  ;;  %p38_p8 = scmp.ne.s32.totalorder %s1227_s23, %s1223_s22 }
  0x5b   : > { %p39_p13 = scmp.eq.s32.totalorder %s1231_s24, 0  ;;  %p953_p6 = scmp.lt.s32.totalorder %s1231_s24, 2 }
  0x5c   : > { %s1423_s8 = scalar_select %p29_p4, %s1227_s23, %s31_s16  }
  0x5d   : > { %p40_p10 = por %p39_p13, %p38_p8  ;;  %p1595_p3 = scmp.eq.s32.totalorder %s1303_s25, 1 }
  0x5e   : > { %s242_s14 = sand.u32 1, %s1227_s23   ;;  %s869_s15 = sshll.u32 %s1231_s24, 7 }
  0x5f   : > { %p1427_p5 = por %p1595_p3, %p38_p8  ;;  %s828_s17 = sshll.u32 %s242_s14, 3 }
  0x60   : > { %s1436_s11 = scalar_lea.hbm %s1578_s0, %s869_s15  ;;  %s246_s10 = scalar_lea.vmem [#allocation2], %s828_s17 }
  0x61   : > { %s253_s26 = sshll.u32 %s246_s10, 4  ;;  %p1438_p11 = pnand %p953_p6, %p40_p10  ;;  %s1442_s26 = int_to_ptr.vmem [resolvable:$true] %s253_s26 }
  0x62   : > { %s1444_s9 = scalar_lea.sflag [#allocation3], %s242_s14  ;;  %s1127_s1 = scalar_lea.hbm %s1436_s11, 128 }
  0x63   : > { %p1128_p7 = scmp.ne.s32.totalorder %s1436_s11, %s1127_s1  ;;  %p1129_p9 = pneg %p1438_p11 }
  0x64   : > { %s1132_s17 = scalar_lea.hbm %s1578_s0, 256  ;;  %p1133_p2 = scmp.lt.u32.totalorder %s1436_s11, %s1578_s0 }
  0x65   : > { %p1130_p12 = pnand %p1129_p9, %p1128_p7  ;;  %p1134_p1 = scmp.lt.u32.totalorder %s1132_s17, %s1127_s1 }
  0x66   : > { %p1136_p8 = scmp.lt.u32.totalorder %s1127_s1, %s1436_s11 }
  0x67   : > { %p1131_p0 = pneg %p1130_p12  ;;  %p1135_p4 = por %p1134_p1, %p1133_p2 }
  0x69   : > { %p1137_p13 = por %p1136_p8, %p1135_p4 }
  0x6b   : > { %p1138_p6 = pnand %p1137_p13, %p1131_p0 }
  0x6d   : > { %1141 = shalt.err (!%p1138_p6)
}
  0x6e   : > { %s1142_s14 = scalar_lea.vmem %s1442_s26, 128  ;;  %s1240_s10 = smov [#allocation2]  }
  0x6f   : > { %p1143_p10 = scmp.ne.s32.totalorder %s1442_s26, %s1142_s14  ;;  %s1147_s16 = sshll.u32 %s1240_s10, 4  ;;  %s1148_s16 = int_to_ptr.vmem [resolvable:$false] %s1147_s16 }
  0x70   : > { %s1149_s15 = scalar_lea.vmem %s1148_s16, 256  ;;  %p1150_p12 = scmp.lt.s32.totalorder %s1442_s26, %s1148_s16 }
  0x71   : > { %p1145_p3 = pnand %p1143_p10, %p1129_p9  ;;  %p1151_p2 = scmp.lt.s32.totalorder %s1149_s15, %s1142_s14 }
  0x73   : > { %p1146_p7 = pneg %p1145_p3  ;;  %p1152_p1 = por %p1151_p2, %p1150_p12 }
  0x75   : > { %p1153_p4 = pnand %p1152_p1, %p1146_p7 }
  0x77   : > { %1156 = shalt.err (!%p1153_p4)
}
  0x78   : > { %945 = dma.hbm_to_vmem [thread:$0]  (!%p1438_p11), %s1436_s11, 128, %s1442_s26, %s1444_s9, %s1237_s19, %s1237_s19, %s1238_s20  }
  0x79   : > { %p1598_p9 = scmp.ne.s32.totalorder %s1591_s29, 0 }
  0x7a   : > { %s1478_s1 = sand.u32 (!%p1598_p9), 1, %s1223_s22   ;;  %p1599_p0 = scmp.ne.s32.totalorder (!%p1598_p9), %s1589_s27, 0 }
  0x7b   : > { %265 = sbr.rel (%p1598_p9) target bundleno = 1380 (0x564), region = 44  ;;  %s832_s17 = sshll.u32 (!%p1598_p9), %s1478_s1, 3 }
  0x7c   : > { %s268_s18 = scalar_lea.sflag (!%p1598_p9), [#allocation3], %s1478_s1  ;;  %s1482_s7 = scalar_lea.vmem (!%p1598_p9), [#allocation2], %s832_s17 }
  0x82   : > { %1202 = dma.done.wait (%p1599_p0), %s268_s18, 128  }
  0x83   : > { %1204 = vsyncadd (%p1599_p0), %s268_s18, 4294967168  ;;  %p1600_p11 = scmp.eq.s32.totalorder %s1303_s25, 0 }
  0x85   : > { %1206 = dma.done.wait (%p1600_p11), [#allocation6], 3072   ;;  %p1601_p8 = pmov %p1600_p11 }
  0x87   : > { %1208 = vsyncadd (%p1601_p8), [#allocation6], 4294964224  ;;  %p1602_p13 = pmov %p1601_p8 }
  0x88   : > { %p1603_p6 = pmov %p1601_p8 }
  0x89   : > { %1210 = dma.done.wait (%p1602_p13), [#allocation9], 16  }
  0x8a   : > { %1212 = vsyncadd (%p1603_p6), [#allocation9], 4294967280  ;;  %v1241_v0 = vmov 0   ;;  %v1002_v1 = vld [vmem:[#allocation5 + $0x4] ss:$8 sps:$4 sm:$0xff]   ;;  %v1026_v17 = vld [vmem:[%s1482_s7] sm:$0xff]   ;;  %v335_v19 = vlaneseq }
  0x8b   : > { %463 = vmatprep.mubr.bf16.mxu0 %v1241_v0  ;;  %v1004_v2 = vld [vmem:[#allocation5] ss:$8 sps:$4 sm:$0xff]   ;;  %431 = vmatprep.subr.bf16.mxu0 %v1002_v1  ;;  %v1005_v3 = vld [vmem:[#allocation5 + $0x14] ss:$8 sps:$4 sm:$0xff]   ;;  %v1007_v4 = vld [vmem:[#allocation5 + $0x10] ss:$8 sps:$4 sm:$0xff]  }
  0x8c   : > { %432 = vmatpush1.bf16.msra.mxu0 %v1004_v2  ;;  %v1008_v5 = vld [vmem:[#allocation5 + $0x24] ss:$8 sps:$4 sm:$0xff]   ;;  %v1010_v6 = vld [vmem:[#allocation5 + $0x20] ss:$8 sps:$4 sm:$0xff]   ;;  %v1011_v7 = vld [vmem:[#allocation5 + $0x34] ss:$8 sps:$4 sm:$0xff]  }
  0x8d   : > { %433 = vmatprep.subr.bf16.mxu0 %v1005_v3  ;;  %v1013_v8 = vld [vmem:[#allocation5 + $0x30] ss:$8 sps:$4 sm:$0xff]   ;;  %v1014_v9 = vld [vmem:[#allocation5 + $0x44] ss:$8 sps:$4 sm:$0xff]   ;;  %v1016_v10 = vld [vmem:[#allocation5 + $0x40] ss:$8 sps:$4 sm:$0xff]  }
  0x8e   : > { %v1017_v11 = vld [vmem:[#allocation5 + $0x54] ss:$8 sps:$4 sm:$0xff]   ;;  %v1019_v12 = vld [vmem:[#allocation5 + $0x50] ss:$8 sps:$4 sm:$0xff]   ;;  %v1020_v13 = vld [vmem:[#allocation5 + $0x64] ss:$8 sps:$4 sm:$0xff]  }
  0x8f   : > { %v1022_v14 = vld [vmem:[#allocation5 + $0x60] ss:$8 sps:$4 sm:$0xff]   ;;  %v1023_v15 = vld [vmem:[#allocation5 + $0x74] ss:$8 sps:$4 sm:$0xff]   ;;  %v1025_v16 = vld [vmem:[#allocation5 + $0x70] ss:$8 sps:$4 sm:$0xff]  }
  0x90   : > { %434 = vmatpush1.bf16.msra.mxu0 %v1007_v4  ;;  %v1242_v18 = vmov 0.0   ;;  %vm1243_vm0 = vmmov 0   ;;  %v336_v20 = vshrl.u32 %v335_v19, 7  ;;  %v333_v22 = vld [vmem:[%s1580_s2] sm:$0x3]  ;;  %v477_v38 = vld [vmem:[%s1583_s5 + $0x8] sm:$0xff] }
  0x91   : > { %435 = vmatprep.subr.bf16.mxu0 %v1008_v5  ;;  %890 = vmatprep.subr.bf16.mxu1 %v1242_v18  ;;  %v476_v36 = vld [vmem:[%s1583_s5] sm:$0xff]  ;;  %vm519_vm1 = vcmask 130048   ;;  %v1027_v62 = vld [vmem:[#allocation7] sm:$0xff]   ;;  %v1028_v0 = vld [vmem:[#allocation7 + $0x8] sm:$0xff]   ;;  %s836_s30 = sshll.u32 %s1478_s1, 4  ;;  %s870_s10 = sshll.u32 %s1303_s25, 8 }
  0x92   : > { %891 = vmatpush3.bf16.msra.mxu1 %v1026_v17  ;;  %892 = vmatprep.mubr.msk.bf16.mxu1 %vm1243_vm0, %v1242_v18  ;;  %v337_v21 = vsub.s32 0, %v336_v20  ;;  %v341_v23 = vsub.s32 1, %v336_v20  ;;  %v1029_v1 = vld [vmem:[#allocation7 + $0x10] sm:$0xff]   ;;  %v1030_v2 = vld [vmem:[#allocation7 + $0x18] sm:$0xff]   ;;  %v1031_v3 = vld [vmem:[#allocation7 + $0x20] sm:$0xff]   ;;  %s311_s9 = scalar_lea.vmem [#allocation10], %s836_s30  ;;  %s1534_s17 = scalar_lea.hbm %s1584_s6, %s870_s10 }
  0x93   : > { %896 = vmatprep.subr.bf16.mxu1 %v1242_v18  ;;  %v1032_v4 = vld [vmem:[#allocation7 + $0x28] sm:$0xff]   ;;  %v1033_v5 = vld [vmem:[#allocation7 + $0x30] sm:$0xff]   ;;  %s720_s14 = sshll.u32 %s311_s9, 4  ;;  %s707_s18 = scalar_lea.sflag [#allocation4], %s1478_s1  ;;  %s1529_s14 = int_to_ptr.vmem [resolvable:$true] %s720_s14 }
  0x94   : > { %436 = vmatpush1.bf16.msra.mxu0 %v1010_v6  ;;  %v338_v24 = vrot.slane %v333_v22, %v337_v21  ;;  %v342_v26 = vrot.slane %v333_v22, %v341_v23  ;;  %v1034_v6 = vld [vmem:[#allocation7 + $0x38] sm:$0xff]   ;;  %s1157_s7 = scalar_lea.vmem %s1529_s14, 256  ;;  %s1244_s25 = smov [#allocation10]  }
  0x95   : > { %437 = vmatprep.subr.bf16.mxu0 %v1011_v7  ;;  %p1158_p10 = scmp.ne.s32.totalorder %s1529_s14, %s1157_s7  ;;  %s1161_s27 = sshll.u32 %s1244_s25, 4  ;;  %s1162_s27 = int_to_ptr.vmem [resolvable:$false] %s1161_s27 }
  0x96   : > { %s1163_s29 = scalar_lea.vmem %s1162_s27, 512  ;;  %p1164_p12 = scmp.lt.s32.totalorder %s1529_s14, %s1162_s27 }
  0x97   : > { %p1159_p3 = pnand %p1158_p10, %p1427_p5  ;;  %p1165_p2 = scmp.lt.s32.totalorder %s1163_s29, %s1157_s7 }
  0x98   : > { %438 = vmatpush1.bf16.msra.mxu0 %v1013_v8 }
  0x99   : > { %439 = vmatprep.subr.bf16.mxu0 %v1014_v9  ;;  %p1160_p7 = pneg %p1159_p3  ;;  %p1166_p1 = por %p1165_p2, %p1164_p12 }
  0x9b   : > { %p1167_p4 = pnand %p1166_p1, %p1160_p7 }
  0x9c   : > { %440 = vmatpush1.bf16.msra.mxu0 %v1016_v10 }
  0x9d   : > { %441 = vmatprep.subr.bf16.mxu0 %v1017_v11 }
  0xa0   : > { %442 = vmatpush1.bf16.msra.mxu0 %v1019_v12  ;;  %v855_v12 = vld [vmem:[#allocation8] ss:$0 sm:$0xff] }
  0xa1   : > { %443 = vmatprep.subr.bf16.mxu0 %v1020_v13 }
  0xa4   : > { %444 = vmatpush1.bf16.msra.mxu0 %v1022_v14 }
  0xa5   : > { %445 = vmatprep.subr.bf16.mxu0 %v1023_v15 }
  0xa8   : > { %446 = vmatpush1.bf16.msra.mxu0 %v1025_v16 }
  0xa9   : > { %884 = vmatprep.subr.bf16.mxu0 %v1242_v18 }
  0xab   : > { %464 = vmatmul.mubr.bf16.vlgmr.msra.gmra.mrb[0].mxu0 %v1026_v17 }
  0xac   : > { %886 = vmatprep.mubr.msk.bf16.mxu0 %vm1243_vm0, %v1242_v18 }
 0x17e   : > { %v465_v25 = vpop.f32.mrb[0].mxu0 }
 0x17f   : > { %v467_v27 = vpop.f32.mrb[1].mxu0  ;;  %v466_v29 = vadd.f32 %v465_v25, %v338_v24 }
 0x180   : > { %v469_v28 = vpop.f32.mrb[2].mxu0  ;;  %v468_v32 = vadd.f32 %v467_v27, %v342_v26 }
 0x181   : > { %v470_v30 = vadd.f32 %v469_v28, %v338_v24  ;;  %v471_v31 = vpop.f32.mrb[3].mxu0 }
 0x182   : > { %v472_v33 = vadd.f32 %v471_v31, %v342_v26 }
 0x183   : > { %v474_v34 = vpack.c.bf16 %v470_v30, %v466_v29 }
 0x184   : > { %v475_v35 = vpack.c.bf16 %v472_v33, %v468_v32 }
 0x186   : > { %885 = vmatpush3.bf16.xpose.msra.mxu0 %v475_v35 }
 0x18d   : > { %887 = vmatmul.mubr.bf16.vlgmr.msra.gmra.mrb[4].mxu0 %v474_v34 }
 0x260   : > { %v512_v37 = vpop.f32.mrb[4].mxu0 }
 0x261   : > { %v513_v39 = vadd.f32 %v512_v37, %v476_v36  ;;  %v888_v40 = vpop.f32.mrb[5].mxu0 }
 0x262   : > { %v515_v41 = vpop.f32.mrb[6].mxu0 }
 0x263   : > { %v516_v42 = vadd.f32 %v515_v41, %v477_v38  ;;  %v889_v43 = vpop.f32.mrb[7].mxu0  ;;  %v520_v44 = vsel %vm519_vm1, %v513_v39, -inf }
 0x264   : > { %521 = vmax.xlane.f32.xlu0 %v520_v44 }
 0x265   : > { %v523_v45 = vsel %vm519_vm1, %v516_v42, -inf }
 0x268   : > { %524 = vmax.xlane.f32.xlu0 %v523_v45 }
 0x2f1   : > { %v522_v46 = vpop.xlane.xlu0 %521 }
 0x2f2   : > { %v526_v47 = vsub.f32 %v513_v39, %v522_v46 }
 0x2f4   : > { %v528_v48 = vmul.f32 1.442695, %v526_v47 }
 0x2f5   : > { %v525_v49 = vpop.xlane.xlu0 %524 }
 0x2f6   : > { %1035 = vpow2.f32 %v528_v48  ;;  %v527_v50 = vsub.f32 %v516_v42, %v525_v49 }
 0x2f8   : > { %v530_v51 = vmul.f32 1.442695, %v527_v50 }
 0x2fa   : > { %1037 = vpow2.f32 %v530_v51 }
 0x300   : > { %v1036_v52 = vpop.eup %1035 }
 0x301   : > { %v532_v53 = vsel %vm519_vm1, %v1036_v52, 0.0 }
 0x302   : > { %533 = vadd.xlane.f32.xlu1 %v532_v53 }
 0x304   : > { %v1038_v54 = vpop.eup %1037 }
 0x305   : > { %v535_v55 = vsel %vm519_vm1, %v1038_v54, 0.0 }
 0x306   : > { %536 = vadd.xlane.f32.xlu1 %v535_v55 }
 0x38f   : > { %v534_v56 = vpop.xlane.xlu1 %533 }
 0x390   : > { %1039 = vrcp.f32 %v534_v56 }
 0x393   : > { %v537_v57 = vpop.xlane.xlu1 %536 }
 0x394   : > { %1041 = vrcp.f32 %v537_v57 }
 0x39a   : > { %v1040_v58 = vpop.eup %1039 }
 0x39b   : > { %v542_v60 = vmul.f32 %v1040_v58, %v1036_v52 }
 0x39e   : > { %v1042_v59 = vpop.eup %1041 }
 0x39f   : > { %v543_v61 = vmul.f32 %v1042_v59, %v1038_v54 }
 0x3a1   : > { %v544_v63 = vpack.c.bf16 %v543_v61, %v542_v60 }
 0x3a3   : > { %893 = vmatmul.mubr.msk.bf16.vlgmr.msra.gmra.mrb[0].mxu1 %vm519_vm1, %v544_v63 }
 0x3a4   : > { %897 = vmatpush3.bf16.msra.mxu1 %v1027_v62  ;;  %912 = vmatprep.mubr.msk.bf16.mxu1 %vm1243_vm0, %v1242_v18 }
 0x3a5   : > { %898 = vmatprep.subr.bf16.mxu1 %v1242_v18 }
 0x3a8   : > { %899 = vmatpush3.bf16.msra.mxu1 %v1028_v0 }
 0x3a9   : > { %900 = vmatprep.subr.bf16.mxu1 %v1242_v18 }
 0x3ac   : > { %901 = vmatpush3.bf16.msra.mxu1 %v1029_v1 }
 0x3ad   : > { %902 = vmatprep.subr.bf16.mxu1 %v1242_v18 }
 0x3b0   : > { %903 = vmatpush3.bf16.msra.mxu1 %v1030_v2 }
 0x3b1   : > { %904 = vmatprep.subr.bf16.mxu1 %v1242_v18 }
 0x3b4   : > { %905 = vmatpush3.bf16.msra.mxu1 %v1031_v3 }
 0x3b5   : > { %906 = vmatprep.subr.bf16.mxu1 %v1242_v18 }
 0x3b8   : > { %907 = vmatpush3.bf16.msra.mxu1 %v1032_v4 }
 0x3b9   : > { %908 = vmatprep.subr.bf16.mxu1 %v1242_v18 }
 0x3bc   : > { %909 = vmatpush3.bf16.msra.mxu1 %v1033_v5 }
 0x3bd   : > { %910 = vmatprep.subr.bf16.mxu1 %v1242_v18 }
 0x3c0   : > { %911 = vmatpush3.bf16.msra.mxu1 %v1034_v6 }
 0x476   : > { %v582_v7 = vpop.f32.mrb[0].mxu1 }
 0x477   : > { %v894_v8 = vpop.f32.mrb[1].mxu1 }
 0x478   : > { %v585_v9 = vpop.f32.mrb[2].mxu1 }
 0x479   : > { %v589_v10 = vpack.c.bf16 %v585_v9, %v582_v7  ;;  %v895_v11 = vpop.f32.mrb[3].mxu1 }
 0x47b   : > { %913 = vmatmul.mubr.bf16.vlgmr.msra.gmra.mrb[4].mxu1 %v589_v10 }
 0x54e   : > { %v695_v13 = vpop.f32.mrb[4].mxu1 }
 0x54f   : > { %v696_v14 = vadd.f32 %v855_v12, %v695_v13  ;;  %v914_v15 = vpop.f32.mrb[5].mxu1 }
 0x550   : > { %v698_v16 = vpop.f32.mrb[6].mxu1 }
 0x551   : > { %v702_v17 = vmax.f32 %v696_v14, 0.0  ;;  %v699_v18 = vadd.f32 %v855_v12, %v698_v16  ;;  %v915_v19 = vpop.f32.mrb[7].mxu1 }
 0x553   : > { %704 = vst [vmem:[%s311_s9] sm:$0xff] %v702_v17  ;;  %v703_v20 = vmax.f32 %v699_v18, 0.0 }
 0x555   : > { %705 = vst [vmem:[%s311_s9 + $0x8] sm:$0xff] %v703_v20 }
 0x556   : > { %1170 = shalt.err (!%p1167_p4)
}
 0x557   : > { %s1171_s19 = scalar_lea.hbm %s1534_s17, 256  ;;  %s1175_s26 = scalar_lea.hbm %s1584_s6, 512 }
 0x558   : > { %p1172_p9 = scmp.ne.s32.totalorder %s1534_s17, %s1171_s19  ;;  %p1176_p8 = scmp.lt.u32.totalorder %s1534_s17, %s1584_s6 }
 0x559   : > { %p1177_p13 = scmp.lt.u32.totalorder %s1175_s26, %s1171_s19  ;;  %p1179_p10 = scmp.lt.u32.totalorder %s1171_s19, %s1534_s17 }
 0x55a   : > { %p1173_p0 = pnand %p1172_p9, %p1427_p5 }
 0x55b   : > { %p1178_p6 = por %p1177_p13, %p1176_p8 }
 0x55c   : > { %p1174_p11 = pneg %p1173_p0 }
 0x55d   : > { %p1180_p3 = por %p1179_p10, %p1178_p6 }
 0x55f   : > { %p1181_p7 = pnand %p1180_p3, %p1174_p11 }
 0x561   : > { %1184 = shalt.err (!%p1181_p7)
}
 0x562   : > { %s1245_s10 = smov 128   ;;  %s1246_s16 = smov 8  }
 0x563   : > { %930 = dma.vmem_to_hbm [thread:$0]  (%p1427_p5), %s1529_s14, 256, %s1534_s17, %s707_s18, %s1245_s10, %s1245_s10, %s1246_s16  }
 0x564 PF: > { %s735_s15 = sand.u32 1, %s1219_s21   ;;  %p1604_p12 = scmp.ne.s32.totalorder %s1590_s28, 0 }
 0x565   : > { %p1605_p2 = scmp.ge.s32.totalorder %s1231_s24, 2  ;;  %s736_s7 = scalar_lea.sflag [#allocation4], %s735_s15 }
 0x567   : > { %p947_p1 = pnand %p1605_p2, %p1604_p12 }
 0x569   : > { %1214 = dma.done.wait (!%p947_p1), %s736_s7, 256  }
 0x56a   : > { %1216 = vsyncadd (!%p947_p1), %s736_s7, 4294967040  ;;  %p21_p4 = scmp.ge.s32.totalorder %s1395_s12, 4   ;;  %s1606_s21 = smov %s1223_s22 }
 0x56b   : > { %s1607_s22 = smov %s1227_s23  ;;  %s1608_s23 = smov %s1423_s8 }
 0x56c   : > { %s1609_s24 = smov %s1395_s12  ;;  %23 = sbr.rel (!%p21_p4) target bundleno = 9 (0x9), region = 101 }
 0x573   :  { %741 = vsyncpa [#allocation3], 1 }
 0x574   :  { %743 = vsyncpa [#allocation3 + $0x1], 1 }
 0x575   :  { %744 = vsyncpa [#allocation6], 1 }
 0x576   :  { %745 = vsyncpa [#allocation9], 1 }
 0x577   :  { %746 = vsyncpa [#allocation4], 1 }
 0x578   :  { %748 = vsyncpa [#allocation4 + $0x1], 1 }

</bundles_post_ra>
